<compile_context>
chip_gen: v7x
topology: tpu7x:2x2x1
jax: 0.10.0
libtpu: 0.0.40
codegen_flags: <defaults>
</compile_context>

<pallas_src>
import functools

import jax
import jax.numpy as jnp
from jax import lax
from jax.experimental import pallas as pl
from jax.experimental.pallas import tpu as pltpu


def _round_up(x: int, m: int) -> int:
    return ((x + m - 1) // m) * m


def _dense_kernel(x_ref, w_ref, b_ref, o_ref, acc_ref):
    """One (tm, tn) output tile, accumulated over the K grid axis.

    x_ref : (tm, tk)      activation tile
    w_ref : (tn, tk)      weight tile in PyTorch (D_out, D_in) layout
    b_ref : (1,  tn)      bias tile
    o_ref : (tm, tn)      output tile (lane-dense, multiple of 128)
    acc_ref: (tm, tn) f32 VMEM accumulator scratch
    """
    k = pl.program_id(2)

    @pl.when(k == 0)
    def _():
        acc_ref[...] = jnp.zeros_like(acc_ref)

    # Contract x's dim 1 with w's dim 1 (i.e. x @ w.T) directly on the MXU --
    # no transposed copy of the weight is ever materialized in HBM.
    acc_ref[...] += lax.dot_general(
        x_ref[...],
        w_ref[...],
        dimension_numbers=(((1,), (1,)), ((), ())),
        preferred_element_type=jnp.float32,
    )

    @pl.when(k == pl.num_programs(2) - 1)
    def _():
        o_ref[...] = (acc_ref[...] + b_ref[...].astype(jnp.float32)).astype(o_ref.dtype)


def dense_forward(x, weight, bias):
    """x: (B, D_in), weight: (D_out, D_in) [PyTorch layout], bias: (D_out,).

    Returns (B, D_out, 1, 1), matching `self.dense(x)[..., None, None]`.
    """
    B, D_in = x.shape
    D_out, D_in_w = weight.shape
    assert D_in_w == D_in, (weight.shape, x.shape)

    # ---- tile selection (generation-aware, VMEM-safe on v7x) ----------------
    tm = min(128, _round_up(max(B, 1), 8))            # sublane multiple of 8
    tn = 256 if D_out >= 256 else 128                 # lane-dense, 256 for v6e/v7x MXU
    tk = min(512, _round_up(D_in, 128))                # K tile, multiple of 128

    Bp = _round_up(B, tm)
    Np = _round_up(D_out, tn)
    Kp = _round_up(D_in, tk)

    # ---- zero-pad to tile multiples (zeros don't change x @ W.T) ------------
    x_p = x if (Bp == B and Kp == D_in) else jnp.pad(x, ((0, Bp - B), (0, Kp - D_in)))
    w_p = weight if (Np == D_out and Kp == D_in) else jnp.pad(
        weight, ((0, Np - D_out), (0, Kp - D_in)))
    b_p = bias if Np == D_out else jnp.pad(bias, (0, Np - D_out))
    b_p = b_p.reshape(1, Np)

    grid = (Bp // tm, Np // tn, Kp // tk)

    # VMEM budget: double-buffered input/output tiles + accumulator, with
    # generous headroom, clamped so it stays comfortably inside v7x's 64 MiB.
    tile_bytes = 4 * (2 * tm * tk + 2 * tn * tk + 2 * tn + 2 * tm * tn + tm * tn)
    vmem_limit = int(min(48 * 1024 * 1024, max(16 * 1024 * 1024, 4 * tile_bytes)))

    out = pl.pallas_call(
        _dense_kernel,
        out_shape=jax.ShapeDtypeStruct((Bp, Np), x.dtype),
        grid_spec=pltpu.PrefetchScalarGridSpec(
            num_scalar_prefetch=0,
            grid=grid,
            in_specs=[
                pl.BlockSpec((tm, tk), lambda i, j, k: (i, k)),   # x
                pl.BlockSpec((tn, tk), lambda i, j, k: (j, k)),   # weight (D_out, D_in)
                pl.BlockSpec((1, tn), lambda i, j, k: (0, j)),    # bias
            ],
            out_specs=pl.BlockSpec((tm, tn), lambda i, j, k: (i, j)),
            scratch_shapes=[pltpu.VMEM((tm, tn), jnp.float32)],
        ),
        compiler_params=pltpu.CompilerParams(
            dimension_semantics=("parallel", "parallel", "arbitrary"),
            vmem_limit_bytes=vmem_limit,
        ),
    )(x_p, w_p, b_p)

    out = out[:B, :D_out]
    # PyTorch: self.dense(x)[..., None, None]  -> (B, D_out, 1, 1)
    return out[..., None, None]


if __name__ == "__main__":
    dense = jax.jit(dense_forward)

    key = jax.random.PRNGKey(0)

    # ---- case 1: shapes taken from the Model's temb_proj (Linear(temb_ch=512, ch=128)) ----
    batch, input_dim, output_dim = 2, 512, 128
    kx, kw, kb = jax.random.split(key, 3)
    x = jax.random.normal(kx, (batch, input_dim), dtype=jnp.float32)
    bound = 1.0 / (input_dim ** 0.5)   # nn.Linear default init range
    weight = jax.random.uniform(kw, (output_dim, input_dim),
                                minval=-bound, maxval=bound, dtype=jnp.float32)
    bias = jax.random.uniform(kb, (output_dim,),
                              minval=-bound, maxval=bound, dtype=jnp.float32)

    y = jax.block_until_ready(dense(x, weight, bias))
    y_ref = (x @ weight.T + bias)[..., None, None]
    assert y.shape == (batch, output_dim, 1, 1), y.shape
    assert jnp.allclose(y, y_ref, atol=1e-5, rtol=1e-5)

    # ---- case 2: non-lane-aligned shapes (exercises the pad + slice-back path) ----
    batch2, in2, out2 = 2, 32, 64
    k2x, k2w, k2b = jax.random.split(jax.random.PRNGKey(1), 3)
    x2 = jax.random.normal(k2x, (batch2, in2), dtype=jnp.float32)
    bound2 = 1.0 / (in2 ** 0.5)
    w2 = jax.random.uniform(k2w, (out2, in2), minval=-bound2, maxval=bound2,
                            dtype=jnp.float32)
    b2 = jax.random.uniform(k2b, (out2,), minval=-bound2, maxval=bound2,
                            dtype=jnp.float32)

    y2 = jax.block_until_ready(dense(x2, w2, b2))
    y2_ref = (x2 @ w2.T + b2)[..., None, None]
    assert y2.shape == (batch2, out2, 1, 1), y2.shape
    assert jnp.allclose(y2, y2_ref, atol=1e-5, rtol=1e-5)

    print("KERNEL_OK")
</pallas_src>

<mosaic_0001>
module attributes {stable_mosaic.version = 11 : i64} {
  func.func @_dense_kernel(%arg0: i32, %arg1: i32, %arg2: i32, %arg3: memref<8x512xf32, #tpu.memory_space<vmem>>, %arg4: memref<128x512xf32, #tpu.memory_space<vmem>>, %arg5: memref<1x128xf32, #tpu.memory_space<vmem>>, %arg6: memref<8x128xf32, #tpu.memory_space<vmem>>, %arg7: memref<8x128xf32, #tpu.memory_space<vmem>>) attributes {dimension_semantics = [#tpu.dimension_semantics<parallel>, #tpu.dimension_semantics<parallel>, #tpu.dimension_semantics<arbitrary>], iteration_bounds = array<i64: 1, 1, 1>, scalar_prefetch = 0 : i64, scratch_operands = 1 : i64, tpu.core_type = #tpu.core_type<tc>, window_params = [{transform_indices = @transform_0, window_bounds = array<i64: 8, 512>}, {transform_indices = @transform_1, window_bounds = array<i64: 128, 512>}, {transform_indices = @transform_2, window_bounds = array<i64: 1, 128>}, {transform_indices = @transform_3, window_bounds = array<i64: 8, 128>}]} {
    %c0_i32 = arith.constant 0 : i32
    %0 = arith.cmpi eq, %arg2, %c0_i32 : i32
    %1 = arith.extui %0 : i1 to i32
    %c0_i32_0 = arith.constant 0 : i32
    %2 = arith.cmpi ne, %1, %c0_i32_0 : i32
    scf.if %2 {
      %cst_10 = arith.constant 0.000000e+00 : f32
      %12 = vector.broadcast %cst_10 : f32 to vector<8x128xf32>
      %c0_11 = arith.constant 0 : index
      %c0_12 = arith.constant 0 : index
      %13 = vector.load %arg7[%c0_11, %c0_12] : memref<8x128xf32, #tpu.memory_space<vmem>>, vector<8x128xf32>
      tpu.vector_store %arg7[%c0_11, %c0_12], %12 {strides = array<i32>} : memref<8x128xf32, #tpu.memory_space<vmem>>, vector<8x128xf32>,
    } else {
    }
    %c0 = arith.constant 0 : index
    %c0_1 = arith.constant 0 : index
    %3 = vector.load %arg7[%c0, %c0_1] : memref<8x128xf32, #tpu.memory_space<vmem>>, vector<8x128xf32>
    %c0_2 = arith.constant 0 : index
    %c0_3 = arith.constant 0 : index
    %4 = vector.load %arg3[%c0_2, %c0_3] : memref<8x512xf32, #tpu.memory_space<vmem>>, vector<8x512xf32>
    %c0_4 = arith.constant 0 : index
    %c0_5 = arith.constant 0 : index
    %5 = vector.load %arg4[%c0_4, %c0_5] : memref<128x512xf32, #tpu.memory_space<vmem>>, vector<128x512xf32>
    %cst = arith.constant dense<0.000000e+00> : vector<8x128xf32>
    %6 = tpu.matmul %4, %5, %cst {dimension_numbers = #tpu.dot_dimension_numbers<[1], [1], [0], [0], [0, 0, 1, 0], [], []>} : vector<8x512xf32>, vector<128x512xf32>, vector<8x128xf32> -> vector<8x128xf32>
    %7 = arith.addf %3, %6 : vector<8x128xf32>
    %c0_6 = arith.constant 0 : index
    %c0_7 = arith.constant 0 : index
    %8 = vector.load %arg7[%c0_6, %c0_7] : memref<8x128xf32, #tpu.memory_space<vmem>>, vector<8x128xf32>
    tpu.vector_store %arg7[%c0_6, %c0_7], %7 {strides = array<i32>} : memref<8x128xf32, #tpu.memory_space<vmem>>, vector<8x128xf32>,
    %c0_i32_8 = arith.constant 0 : i32
    %9 = arith.cmpi eq, %arg2, %c0_i32_8 : i32
    %10 = arith.extui %9 : i1 to i32
    %c0_i32_9 = arith.constant 0 : i32
    %11 = arith.cmpi ne, %10, %c0_i32_9 : i32
    scf.if %11 {
      %c0_10 = arith.constant 0 : index
      %c0_11 = arith.constant 0 : index
      %12 = vector.load %arg7[%c0_10, %c0_11] : memref<8x128xf32, #tpu.memory_space<vmem>>, vector<8x128xf32>
      %c0_12 = arith.constant 0 : index
      %c0_13 = arith.constant 0 : index
      %13 = vector.load %arg5[%c0_12, %c0_13] : memref<1x128xf32, #tpu.memory_space<vmem>>, vector<1x128xf32>
      %14 = vector.broadcast %13 : vector<1x128xf32> to vector<8x128xf32>
      %15 = arith.addf %12, %14 : vector<8x128xf32>
      %c0_14 = arith.constant 0 : index
      %c0_15 = arith.constant 0 : index
      %16 = vector.load %arg6[%c0_14, %c0_15] : memref<8x128xf32, #tpu.memory_space<vmem>>, vector<8x128xf32>
      tpu.vector_store %arg6[%c0_14, %c0_15], %15 {strides = array<i32>} : memref<8x128xf32, #tpu.memory_space<vmem>>, vector<8x128xf32>,
    } else {
    }
    return
  }
  func.func @transform_0(%arg0: i32, %arg1: i32, %arg2: i32) -> (i32, i32) {
    %c0_i32 = arith.constant 0 : i32
    return %arg0, %arg2 : i32, i32
  }
  func.func @transform_1(%arg0: i32, %arg1: i32, %arg2: i32) -> (i32, i32) {
    %c0_i32 = arith.constant 0 : i32
    return %arg1, %arg2 : i32, i32
  }
  func.func @transform_2(%arg0: i32, %arg1: i32, %arg2: i32) -> (i32, i32) {
    %c0_i32 = arith.constant 0 : i32
    %c0_i32_0 = arith.constant 0 : i32
    return %c0_i32, %arg1 : i32, i32
  }
  func.func @transform_3(%arg0: i32, %arg1: i32, %arg2: i32) -> (i32, i32) {
    %c0_i32 = arith.constant 0 : i32
    return %arg0, %arg1 : i32, i32
  }
}

</mosaic_0001>

<bundles_post_ra>
// kernel: dense_forward.1
= control target key start
LH: loop header
LB: loop body
LE: loop exit
PB: predicated region body
PF: predicated region fallthrough
CT: control target
= control target key end

     0   :  { %8 = vsyncpa [#allocation4], 0  ;;  %s354_s12 = smov [#allocation3]   ;;  %s407_s0 = inlined_call_operand.vmem [shape: f32[8,512], index: 0, kind: input, shape index: {}]   ;;  %s408_s1 = inlined_call_operand.hbm [shape: f32[128,512], index: 1, kind: input, shape index: {}]   ;;  %s409_s2 = inlined_call_operand.vmem [shape: f32[1,128], index: 2, kind: input, shape index: {}]   ;;  %s410_s3 = inlined_call_operand.vmem [shape: f32[8,128], index: 3, kind: output, shape index: {}]  }
   0x1   :  { %s16_s13 = sshll.u32 %s354_s12, 4  ;;  %s330_s16 = scalar_lea.hbm %s408_s1, 8192  ;;  %s17_s13 = int_to_ptr.vmem [resolvable:$true] %s16_s13 }
   0x2   :  { %p331_p0 = scmp.ne.s32.totalorder %s408_s1, %s330_s16  ;;  %p334_p1 = scmp.lt.u32.totalorder %s330_s16, %s408_s1 }
   0x4   :  { %p336_p2 = pnand %p334_p1, %p331_p0 }
   0x6   :  { %339 = shalt.err (!%p336_p2)
}
   0x7   :  { %s340_s21 = scalar_lea.vmem %s17_s13, 8192  ;;  %p345_p4 = scmp.lt.s32.totalorder %s17_s13, %s17_s13 }
   0x8   :  { %p341_p3 = scmp.ne.s32.totalorder %s17_s13, %s340_s21  ;;  %p346_p5 = scmp.lt.s32.totalorder %s340_s21, %s340_s21 }
   0xa   :  { %p347_p6 = por %p346_p5, %p345_p4 }
   0xc   :  { %p348_p7 = pnand %p347_p6, %p341_p3 }
   0xe   :  { %351 = shalt.err (!%p348_p7)
}
   0xf   :  { %s355_s22 = smov 512   ;;  %s356_s23 = smov 32  }
  0x10   :  { %22 = dma.hbm_to_vmem [thread:$0]  %s408_s1, 8192, %s17_s13, [#allocation4], %s355_s22, %s355_s22, %s356_s23  }
  0x11   :  { %352 = dma.done.wait [#allocation4], 8192  }
  0x12   :  { %353 = vsyncadd [#allocation4], 4294959104  ;;  %v39_v0 = vld [vmem:[#allocation3 + $0x8] sm:$0xff]  ;;  %v41_v2 = vld [vmem:[#allocation3 + $0x18] sm:$0xff] }
  0x13   :  { %v43_v1 = vld [vmem:[#allocation3 + $0x28] sm:$0xff]  ;;  %v45_v4 = vld [vmem:[#allocation3 + $0x38] sm:$0xff]  ;;  %v38_v5 = vld [vmem:[#allocation3] sm:$0xff] }
  0x14   :  { %v263_v3 = vpack.c.bf16 %v43_v1, %v39_v0  ;;  %v42_v6 = vld [vmem:[#allocation3 + $0x20] sm:$0xff]  ;;  %v295_v7 = vpack.c.bf16 %v45_v4, %v41_v2  ;;  %v40_v9 = vld [vmem:[#allocation3 + $0x10] sm:$0xff]  ;;  %v47_v11 = vld [vmem:[#allocation3 + $0x48] sm:$0xff] }
  0x15   :  { %v265_v8 = vpack.c.bf16 %v42_v6, %v38_v5  ;;  %v44_v10 = vld [vmem:[#allocation3 + $0x30] sm:$0xff]  ;;  %v51_v13 = vld [vmem:[#allocation3 + $0x68] sm:$0xff]  ;;  %v49_v14 = vld [vmem:[#allocation3 + $0x58] sm:$0xff] }
  0x16   :  { %264 = vmatprep.subr.bf16.mxu0 %v263_v3  ;;  %v297_v12 = vpack.c.bf16 %v44_v10, %v40_v9  ;;  %v53_v15 = vld [vmem:[#allocation3 + $0x78] sm:$0xff]  ;;  %296 = vmatprep.subr.bf16.mxu1 %v295_v7  ;;  %v267_v16 = vpack.c.bf16 %v51_v13, %v47_v11  ;;  %v46_v18 = vld [vmem:[#allocation3 + $0x40] sm:$0xff]  ;;  %v48_v20 = vld [vmem:[#allocation3 + $0x50] sm:$0xff] }
  0x17   :  { %266 = vmatpush1.bf16.xpose.msra.mxu0 %v265_v8  ;;  %v299_v17 = vpack.c.bf16 %v53_v15, %v49_v14  ;;  %v50_v19 = vld [vmem:[#allocation3 + $0x60] sm:$0xff]  ;;  %v52_v21 = vld [vmem:[#allocation3 + $0x70] sm:$0xff]  ;;  %v55_v22 = vld [vmem:[#allocation3 + $0x88] sm:$0xff] }
  0x18   :  { %298 = vmatpush1.bf16.xpose.msra.mxu1 %v297_v12  ;;  %268 = vmatprep.subr.bf16.mxu0 %v267_v16  ;;  %v59_v23 = vld [vmem:[#allocation3 + $0xa8] sm:$0xff]  ;;  %v57_v24 = vld [vmem:[#allocation3 + $0x98] sm:$0xff]  ;;  %v269_v26 = vpack.c.bf16 %v50_v19, %v46_v18  ;;  %v301_v27 = vpack.c.bf16 %v52_v21, %v48_v20  ;;  %v54_v30 = vld [vmem:[#allocation3 + $0x80] sm:$0xff] }
  0x19   :  { %300 = vmatprep.subr.bf16.mxu1 %v299_v17  ;;  %v61_v25 = vld [vmem:[#allocation3 + $0xb8] sm:$0xff]  ;;  %v271_v28 = vpack.c.bf16 %v59_v23, %v55_v22  ;;  %v58_v31 = vld [vmem:[#allocation3 + $0xa0] sm:$0xff]  ;;  %v56_v32 = vld [vmem:[#allocation3 + $0x90] sm:$0xff] }
  0x1a   :  { %v303_v29 = vpack.c.bf16 %v61_v25, %v57_v24  ;;  %v60_v33 = vld [vmem:[#allocation3 + $0xb0] sm:$0xff]  ;;  %v63_v34 = vld [vmem:[#allocation3 + $0xc8] sm:$0xff]  ;;  %v65_v36 = vld [vmem:[#allocation3 + $0xd8] sm:$0xff]  ;;  %v273_v38 = vpack.c.bf16 %v58_v31, %v54_v30 }
  0x1b   :  { %v67_v35 = vld [vmem:[#allocation3 + $0xe8] sm:$0xff]  ;;  %v69_v37 = vld [vmem:[#allocation3 + $0xf8] sm:$0xff]  ;;  %v305_v39 = vpack.c.bf16 %v60_v33, %v56_v32  ;;  %v62_v42 = vld [vmem:[#allocation3 + $0xc0] sm:$0xff] }
  0x1c   :  { %v275_v40 = vpack.c.bf16 %v67_v35, %v63_v34  ;;  %v307_v41 = vpack.c.bf16 %v69_v37, %v65_v36  ;;  %v66_v43 = vld [vmem:[#allocation3 + $0xe0] sm:$0xff]  ;;  %v64_v44 = vld [vmem:[#allocation3 + $0xd0] sm:$0xff]  ;;  %v35_v45 = vld [vmem:[%s407_s0 + $0x8] sm:$0xff] }
  0x1d   :  { %v37_v46 = vld [vmem:[%s407_s0 + $0x18] sm:$0xff]  ;;  %v68_v47 = vld [vmem:[#allocation3 + $0xf0] sm:$0xff]  ;;  %v71_v48 = vld [vmem:[#allocation3 + $0x108] sm:$0xff]  ;;  %166 = vmatprep.mubr.f32.mxu0 %v35_v45  ;;  %v277_v52 = vpack.c.bf16 %v66_v43, %v62_v42 }
  0x1e   :  { %v75_v49 = vld [vmem:[#allocation3 + $0x128] sm:$0xff]  ;;  %v73_v50 = vld [vmem:[#allocation3 + $0x118] sm:$0xff]  ;;  %236 = vmatprep.mubr.f32.mxu1 %v37_v46  ;;  %v309_v53 = vpack.c.bf16 %v68_v47, %v64_v44  ;;  %v70_v56 = vld [vmem:[#allocation3 + $0x100] sm:$0xff] }
  0x1f   :  { %270 = vmatpush1.bf16.xpose.msra.mxu0 %v269_v26  ;;  %v77_v51 = vld [vmem:[#allocation3 + $0x138] sm:$0xff]  ;;  %v279_v54 = vpack.c.bf16 %v75_v49, %v71_v48  ;;  %v74_v57 = vld [vmem:[#allocation3 + $0x120] sm:$0xff]  ;;  %v72_v58 = vld [vmem:[#allocation3 + $0x110] sm:$0xff] }
  0x20   :  { %302 = vmatpush1.bf16.xpose.msra.mxu1 %v301_v27  ;;  %272 = vmatprep.subr.bf16.mxu0 %v271_v28  ;;  %v311_v55 = vpack.c.bf16 %v77_v51, %v73_v50  ;;  %v76_v59 = vld [vmem:[#allocation3 + $0x130] sm:$0xff]  ;;  %v79_v60 = vld [vmem:[#allocation3 + $0x148] sm:$0xff]  ;;  %v81_v62 = vld [vmem:[#allocation3 + $0x158] sm:$0xff]  ;;  %v281_v0 = vpack.c.bf16 %v74_v57, %v70_v56 }
  0x21   :  { %304 = vmatprep.subr.bf16.mxu1 %v303_v29  ;;  %v83_v61 = vld [vmem:[#allocation3 + $0x168] sm:$0xff]  ;;  %v85_v63 = vld [vmem:[#allocation3 + $0x178] sm:$0xff]  ;;  %v313_v1 = vpack.c.bf16 %v76_v59, %v72_v58  ;;  %v78_v4 = vld [vmem:[#allocation3 + $0x140] sm:$0xff] }
  0x22   :  { %v283_v2 = vpack.c.bf16 %v83_v61, %v79_v60  ;;  %v315_v3 = vpack.c.bf16 %v85_v63, %v81_v62  ;;  %v82_v5 = vld [vmem:[#allocation3 + $0x160] sm:$0xff]  ;;  %v80_v6 = vld [vmem:[#allocation3 + $0x150] sm:$0xff]  ;;  %v87_v8 = vld [vmem:[#allocation3 + $0x188] sm:$0xff] }
  0x23   :  { %v84_v7 = vld [vmem:[#allocation3 + $0x170] sm:$0xff]  ;;  %v91_v9 = vld [vmem:[#allocation3 + $0x1a8] sm:$0xff]  ;;  %v89_v10 = vld [vmem:[#allocation3 + $0x198] sm:$0xff]  ;;  %v285_v12 = vpack.c.bf16 %v82_v5, %v78_v4 }
  0x24   :  { %v93_v11 = vld [vmem:[#allocation3 + $0x1b8] sm:$0xff]  ;;  %v317_v13 = vpack.c.bf16 %v84_v7, %v80_v6  ;;  %v287_v14 = vpack.c.bf16 %v91_v9, %v87_v8  ;;  %v86_v16 = vld [vmem:[#allocation3 + $0x180] sm:$0xff]  ;;  %v88_v18 = vld [vmem:[#allocation3 + $0x190] sm:$0xff] }
  0x25   :  { %v319_v15 = vpack.c.bf16 %v93_v11, %v89_v10  ;;  %v90_v17 = vld [vmem:[#allocation3 + $0x1a0] sm:$0xff]  ;;  %v92_v19 = vld [vmem:[#allocation3 + $0x1b0] sm:$0xff]  ;;  %v95_v20 = vld [vmem:[#allocation3 + $0x1c8] sm:$0xff] }
  0x26   :  { %v99_v21 = vld [vmem:[#allocation3 + $0x1e8] sm:$0xff]  ;;  %v97_v22 = vld [vmem:[#allocation3 + $0x1d8] sm:$0xff]  ;;  %v289_v24 = vpack.c.bf16 %v90_v17, %v86_v16  ;;  %v321_v25 = vpack.c.bf16 %v92_v19, %v88_v18  ;;  %v94_v28 = vld [vmem:[#allocation3 + $0x1c0] sm:$0xff] }
  0x27   :  { %274 = vmatpush1.bf16.xpose.msra.mxu0 %v273_v38  ;;  %v101_v23 = vld [vmem:[#allocation3 + $0x1f8] sm:$0xff]  ;;  %v291_v26 = vpack.c.bf16 %v99_v21, %v95_v20  ;;  %v98_v29 = vld [vmem:[#allocation3 + $0x1e0] sm:$0xff]  ;;  %v96_v30 = vld [vmem:[#allocation3 + $0x1d0] sm:$0xff] }
  0x28   :  { %306 = vmatpush1.bf16.xpose.msra.mxu1 %v305_v39  ;;  %276 = vmatprep.subr.bf16.mxu0 %v275_v40  ;;  %v323_v27 = vpack.c.bf16 %v101_v23, %v97_v22  ;;  %v100_v31 = vld [vmem:[#allocation3 + $0x1f0] sm:$0xff]  ;;  %v293_v32 = vpack.c.bf16 %v98_v29, %v94_v28  ;;  %v34_v34 = vld [vmem:[%s407_s0] sm:$0xff] }
  0x29   :  { %308 = vmatprep.subr.bf16.mxu1 %v307_v41  ;;  %v325_v33 = vpack.c.bf16 %v100_v31, %v96_v30  ;;  %v36_v35 = vld [vmem:[%s407_s0 + $0x10] sm:$0xff]  ;;  %v262_v38 = vld [vmem:[%s409_s2] ss:$0 sm:$0xff] }
  0x2f   :  { %278 = vmatpush1.bf16.xpose.msra.mxu0 %v277_v52 }
  0x30   :  { %310 = vmatpush1.bf16.xpose.msra.mxu1 %v309_v53  ;;  %280 = vmatprep.subr.bf16.mxu0 %v279_v54 }
  0x31   :  { %312 = vmatprep.subr.bf16.mxu1 %v311_v55 }
  0x37   :  { %282 = vmatpush1.bf16.xpose.msra.mxu0 %v281_v0 }
  0x38   :  { %314 = vmatpush1.bf16.xpose.msra.mxu1 %v313_v1  ;;  %284 = vmatprep.subr.bf16.mxu0 %v283_v2 }
  0x39   :  { %316 = vmatprep.subr.bf16.mxu1 %v315_v3 }
  0x3f   :  { %286 = vmatpush1.bf16.xpose.msra.mxu0 %v285_v12 }
  0x40   :  { %318 = vmatpush1.bf16.xpose.msra.mxu1 %v317_v13  ;;  %288 = vmatprep.subr.bf16.mxu0 %v287_v14 }
  0x41   :  { %320 = vmatprep.subr.bf16.mxu1 %v319_v15 }
  0x47   :  { %290 = vmatpush1.bf16.xpose.msra.mxu0 %v289_v24 }
  0x48   :  { %322 = vmatpush1.bf16.xpose.msra.mxu1 %v321_v25  ;;  %292 = vmatprep.subr.bf16.mxu0 %v291_v26 }
  0x49   :  { %324 = vmatprep.subr.bf16.mxu1 %v323_v27 }
  0x4f   :  { %294 = vmatpush1.bf16.xpose.msra.mxu0 %v293_v32 }
  0x50   :  { %326 = vmatpush1.bf16.xpose.msra.mxu1 %v325_v33 }
  0x56   :  { %167 = vmatmul.mubr.f32.vlgmr.msra.gmra.mrb[0].mxu0 %v34_v34 }
  0x57   :  { %237 = vmatmul.mubr.f32.vlgmr.msra.gmra.mrb[0].mxu1 %v36_v35 }
 0x129   :  { %v168_v36 = vpop.f32.mrb[0].mxu0 }
 0x12a   :  { %v238_v37 = vpop.f32.mrb[0].mxu1  ;;  %v170_v39 = vpop.f32.mrb[1].mxu0 }
 0x12b   :  { %v239_v40 = vadd.f32 %v238_v37, %v168_v36  ;;  %v240_v41 = vpop.f32.mrb[1].mxu1 }
 0x12d   :  { %v255_v42 = vadd.f32 %v262_v38, %v239_v40 }
 0x12f   :  { %256 = vst [vmem:[%s410_s3] sm:$0xff] %v255_v42 }
 0x130   :  { %261 = vsyncpa [#allocation4], 1 }

</bundles_post_ra>
